<compile_context>
chip_gen: v7x
topology: tpu7x:2x2x1
jax: 0.10.0
libtpu: 0.0.40
codegen_flags: <defaults>
</compile_context>

<pallas_src>
import functools

import jax
import jax.numpy as jnp
from jax import lax
from jax.experimental import pallas as pl
from jax.experimental.pallas import tpu as pltpu

_A = 0.25    # self._a in the PyTorch module
_B = 1.0     # self._b in the PyTorch module (== 1.0 -> pow(D2, _B) is just D2)
_LOG_EPS = -27.631021115928547   # log(1e-12): the reference's Q clamp
_TINY = 1e-37                    # guards 0*log(0) / log(<=0) NaN hazards


def _onehot00():
    r = lax.broadcasted_iota(jnp.int32, (8, 128), 0)
    c = lax.broadcasted_iota(jnp.int32, (8, 128), 1)
    return (r == 0) & (c == 0)


def _d2_tile(x_tile_ref, xT_ref, colsq_ref):
    """Pairwise squared distances |x_i - x_j|^2 for a (tm, n) row tile."""
    xt = x_tile_ref[...].astype(jnp.float32)            # (tm, d) row tile
    xT = xT_ref[...].astype(jnp.float32)                # (d, n)  resident, (K, N)
    colsq = colsq_ref[...]                              # (1, n)  |x_j|^2 (hoisted)
    rowsq = jnp.sum(xt * xt, axis=1, keepdims=True)     # (tm, 1) |x_i|^2
    gram = lax.dot_general(xt, xT, (((1,), (0,)), ((), ())),
                           preferred_element_type=jnp.float32)    # (tm, n)
    return -2.0 * gram + rowsq + colsq


def _sumq_kernel(has_partial, x_tile_ref, xT_ref, colsq_ref, out_ref):
    """Pass 1: per-tile partial sum of q = 1 / (1 + a * D2)."""
    d2 = _d2_tile(x_tile_ref, xT_ref, colsq_ref)
    # _B == 1.0 -> no pow(); exact division avoids the O(n*eps) sum_t bias of
    # an approximate reciprocal.
    q = 1.0 / (1.0 + _A * d2)
    if has_partial:
        tm, n = q.shape
        i = pl.program_id(0)
        row_ids = i * tm + lax.broadcasted_iota(jnp.int32, (tm, n), 0)
        q = jnp.where(row_ids < n, q, 0.0)
    out_ref[...] = jnp.where(_onehot00(), jnp.sum(q), 0.0)


def _loss_kernel(neg_ratio, has_mimap, has_mamap, has_partial,
                 scal_ref, x_tile_ref, xT_ref, colsq_ref, p_ref, *rest):
    """Pass 2: fully fused (weighted) UMAP cross entropy for a row tile."""
    out_ref = rest[-1]
    mask_refs = rest[:-1]
    i = pl.program_id(0)

    d2 = _d2_tile(x_tile_ref, xT_ref, colsq_ref)
    u = 1.0 + _A * d2                              # == 1 / q   (_B == 1.0)
    P = p_ref[...].astype(jnp.float32)             # per-tile upcast only
    tm, n = P.shape

    inv_s = scal_ref[0]                            # 1 / sum_t        (SMEM)
    log_inv_s = scal_ref[1]                        # log(1 / sum_t)   (SMEM)

    row_ids = i * tm + lax.broadcasted_iota(jnp.int32, (tm, n), 0)
    col_ids = lax.broadcasted_iota(jnp.int32, (tm, n), 1)
    is_diag = row_ids == col_ids

    # log(Q), log(1-Q) without materializing Q (no reciprocal, 2 logs):
    #   Q_off = inv_s / u            -> log(Q)   = log(inv_s) - log(u)
    #   1-Q_off = (u - inv_s) / u    -> log(1-Q) = log(u - inv_s) - log(u)
    logd = jnp.log(u)
    logQ = jnp.maximum(log_inv_s - logd, _LOG_EPS)          # clamp Q >= 1e-12
    log1mQ = jnp.log(jnp.maximum(u - inv_s, _TINY)) - logd  # floor avoids NaN
    # On the diagonal the reference has Q_ii == 1, so both Q-logs vanish.
    logQ = jnp.where(is_diag, 0.0, logQ)
    log1mQ = jnp.where(is_diag, 0.0, log1mQ)

    # P-only logs, fused (previously a separate full HBM pass over P):
    #   log(P + I): off-diag log(P) (0*log(0) guarded), diag log(1 + P).
    diag_f = is_diag.astype(jnp.float32)
    logPI = jnp.log(jnp.maximum(P + diag_f, _TINY))
    log1mP = jnp.log(jnp.maximum(1.0 - P, _TINY))

    ce = P * (logPI - logQ) + (1.0 - P) * (log1mP - log1mQ)

    # Negative-sampling weights, specialized at trace time (no zero-mask DMA):
    #   CE * (1 + r*mimap + mamap/r)
    k = 0
    w = None
    if has_mimap:
        w = 1.0 + neg_ratio * mask_refs[k][...].astype(jnp.float32)
        k += 1
    if has_mamap:
        ma = (1.0 / neg_ratio) * mask_refs[k][...].astype(jnp.float32)
        w = ma + (1.0 if w is None else w)
    if w is not None:
        ce = ce * w

    if has_partial:                                # trace-time specialization
        ce = jnp.where(row_ids < n, ce, 0.0)       # drop padded rows (select)
    out_ref[...] = jnp.where(_onehot00(), jnp.sum(ce), 0.0)


def _vmem_budget():
    """Generation-aware (per-step budget, vmem_limit_bytes)."""
    cap = 64 << 20                                 # conservative v7x default
    try:
        info = pltpu.get_tpu_info()
        cap = int(getattr(info, "vmem_capacity_bytes", cap)) or cap
    except Exception:
        pass
    if cap >= (100 << 20):                         # 128 MiB parts (v5e / v6e)
        return 80 << 20, 112 << 20
    return 24 << 20, 48 << 20                      # 64 MiB per TC (v7x)


def _pick_tm(n, step_bytes_fn, resident, budget):
    """Largest row-tile (multiple of 8, or n itself) fitting the VMEM budget."""
    if resident + step_bytes_fn(n) <= budget:
        return n                                   # single tile: block == full dims
    for cand in (4096, 3072, 2048, 1536, 1024, 768, 512, 384, 256, 192, 128,
                 96, 64, 32, 16, 8):
        if cand <= n and resident + step_bytes_fn(cand) <= budget:
            return cand
    return 8 if n >= 8 else n


def umap_loss(logits, P, mamap=None, mimap=None, neg_sample_ratio=1.0):
    """Pallas implementation of UMAPLoss.forward; returns a scalar f32."""
    n, d = logits.shape
    assert P.shape == (n, n)
    x = logits.astype(jnp.float32)                 # (n, d): tiny vs n^2
    xT = x.T                                       # (d, n): canonical MXU RHS
    colsq = jnp.sum(x * x, axis=1)[None, :]        # (1, n): hoisted |x_j|^2

    step_budget, limit_cap = _vmem_budget()
    resident = n * d * 4 + n * 4 + (64 << 10)      # xT + colsq + slack
    params = pltpu.CompilerParams(
        dimension_semantics=("parallel",),         # shard row tiles (megacore)
        vmem_limit_bytes=int(limit_cap))

    xT_spec = pl.BlockSpec((d, n), lambda i: (0, 0))      # resident
    cs_spec = pl.BlockSpec((1, n), lambda i: (0, 0))      # resident
    out_blk = pl.BlockSpec((8, 128), lambda i: (i, 0))    # lane-dense partials

    # ---- pass 1: global sum of the student-t kernel (no P / masks) --------
    def p1_step(tm):
        return 2 * tm * d * 4 + 4 * tm * n * 4 + 2 * 8 * 128 * 4
    tm1 = _pick_tm(n, p1_step, resident, step_budget)
    grid1 = pl.cdiv(n, tm1)
    part_q = pl.pallas_call(
        functools.partial(_sumq_kernel, n % tm1 != 0),
        grid=(grid1,),
        in_specs=[pl.BlockSpec((tm1, d), lambda i: (i, 0)), xT_spec, cs_spec],
        out_specs=out_blk,
        out_shape=jax.ShapeDtypeStruct((grid1 * 8, 128), jnp.float32),
        compiler_params=params,
    )(x, xT, colsq)
    sum_t = jnp.sum(part_q) - jnp.float32(n)
    # SMEM scalars for pass 2: 1/sum_t and log(1/sum_t).
    scal = jnp.stack([1.0 / sum_t, -jnp.log(sum_t)]).astype(jnp.float32)

    # ---- pass 2: fully fused (weighted) cross entropy ----------------------
    p_bytes = jnp.dtype(P.dtype).itemsize
    m_bytes = sum(jnp.dtype(m.dtype).itemsize
                  for m in (mimap, mamap) if m is not None)

    def p2_step(tm):
        return (2 * tm * d * 4 + 2 * tm * n * p_bytes + 2 * tm * n * m_bytes
                + 8 * tm * n * 4 + 2 * 8 * 128 * 4)
    tm2 = _pick_tm(n, p2_step, resident, step_budget)
    grid2 = pl.cdiv(n, tm2)

    nn_tile = pl.BlockSpec((tm2, n), lambda i: (i, 0))
    smem_spec = pl.BlockSpec(memory_space=pltpu.MemorySpace.SMEM)

    kernel = functools.partial(_loss_kernel, float(neg_sample_ratio),
                               mimap is not None, mamap is not None,
                               n % tm2 != 0)
    in_specs = [smem_spec, pl.BlockSpec((tm2, d), lambda i: (i, 0)),
                xT_spec, cs_spec, nn_tile]
    args = [scal, x, xT, colsq, P]                 # P/masks in caller's dtype
    for m in (mimap, mamap):                       # trace-time specialization
        if m is not None:
            in_specs.append(nn_tile)
            args.append(m)
    part_ce = pl.pallas_call(
        kernel,
        grid=(grid2,),
        in_specs=in_specs,
        out_specs=out_blk,
        out_shape=jax.ShapeDtypeStruct((grid2 * 8, 128), jnp.float32),
        compiler_params=params,
    )(*args)
    return jnp.sum(part_ce)


# ---------------------------------------------------------------------------
# Pure-JAX reference (mirrors the PyTorch module) for correctness checks.
# ---------------------------------------------------------------------------
def umap_loss_ref(logits, P, mamap=None, mimap=None, neg_sample_ratio=1.0):
    logits = logits.astype(jnp.float32)
    P = P.astype(jnp.float32)
    n = logits.shape[0]
    eye = jnp.eye(n, dtype=jnp.float32)
    sum_x = jnp.sum(logits ** 2, axis=1)
    D2 = (-2.0 * (logits @ logits.T) + sum_x).T + sum_x
    D2p = D2 if _B == 1.0 else D2 ** _B
    q_dist = 1.0 / (1.0 + _A * D2p)
    sum_t = jnp.sum(q_dist) - n
    Q = (q_dist - eye) / sum_t + eye
    Q = jnp.maximum(Q, 1e-12)
    CE = (jnp.log(P + eye) - jnp.log(Q)) * P \
       + (jnp.log(1.0 - P) - jnp.log(1.0 - (Q - eye))) * (1.0 - P)
    if mamap is not None or mimap is not None:
        W = jnp.ones((), jnp.float32)
        if mimap is not None:
            W = W + neg_sample_ratio * mimap
        if mamap is not None:
            W = W + mamap / neg_sample_ratio
        CE = CE * W
    return jnp.sum(CE)


# TODO(synk): find_a_b (scipy.optimize.curve_fit) is init-time host code, not
# part of the forward pass, and is intentionally not translated to Pallas.

if __name__ == "__main__":
    key = jax.random.PRNGKey(0)
    k1, k2, k3, k4, k5, k6 = jax.random.split(key, 6)

    def make_P(k, n):
        P = jax.random.uniform(k, (n, n), minval=0.05, maxval=0.95,
                               dtype=jnp.float32)
        P = 0.5 * (P + P.T)
        return P * (1.0 - jnp.eye(n, dtype=jnp.float32))   # zero diagonal

    # Small case: n=8 points in a 32-dim embedding.
    n, d = 8, 32
    logits = jax.random.normal(k1, (n, d), dtype=jnp.float32)
    P = make_P(k2, n)

    loss = umap_loss(logits, P)
    jax.block_until_ready(loss)
    ref = umap_loss_ref(logits, P)
    assert jnp.allclose(loss, ref, rtol=5e-3, atol=5e-2), (loss, ref)

    # Masked path (both masks) and single-mask specialization.
    mamap = (jax.random.uniform(k3, (n, n)) > 0.5).astype(jnp.float32)
    mimap = (jax.random.uniform(k4, (n, n)) > 0.5).astype(jnp.float32)
    loss_m = umap_loss(logits, P, mamap=mamap, mimap=mimap, neg_sample_ratio=2.0)
    jax.block_until_ready(loss_m)
    ref_m = umap_loss_ref(logits, P, mamap=mamap, mimap=mimap, neg_sample_ratio=2.0)
    assert jnp.allclose(loss_m, ref_m, rtol=5e-3, atol=5e-2), (loss_m, ref_m)

    loss_mi = umap_loss(logits, P, mimap=mimap, neg_sample_ratio=2.0)
    jax.block_until_ready(loss_mi)
    ref_mi = umap_loss_ref(logits, P, mimap=mimap, neg_sample_ratio=2.0)
    assert jnp.allclose(loss_mi, ref_mi, rtol=5e-3, atol=5e-2), (loss_mi, ref_mi)

    # Larger case exercising the row-tiled grid with a partial last tile on
    # every TPU generation's VMEM budget.
    n2, d2 = 2000, 8
    logits2 = jax.random.normal(k5, (n2, d2), dtype=jnp.float32)
    P2 = make_P(k6, n2)
    loss2 = umap_loss(logits2, P2)
    jax.block_until_ready(loss2)
    ref2 = umap_loss_ref(logits2, P2)
    assert jnp.allclose(loss2, ref2, rtol=5e-3, atol=5e-2), (loss2, ref2)

    print("KERNEL_OK")
</pallas_src>

<mosaic_0001>
module attributes {stable_mosaic.version = 11 : i64} {
  func.func @_sumq_kernel(%arg0: i32, %arg1: memref<8x32xf32, #tpu.memory_space<vmem>>, %arg2: memref<32x8xf32, #tpu.memory_space<vmem>>, %arg3: memref<1x8xf32, #tpu.memory_space<vmem>>, %arg4: memref<8x128xf32, #tpu.memory_space<vmem>>) attributes {dimension_semantics = [#tpu.dimension_semantics<parallel>], iteration_bounds = array<i64: 1>, scalar_prefetch = 0 : i64, scratch_operands = 0 : i64, tpu.core_type = #tpu.core_type<tc>, window_params = [{transform_indices = @transform_0, window_bounds = array<i64: 8, 32>}, {pipeline_mode = #tpu.pipeline_mode<synchronous>, transform_indices = @transform_1, window_bounds = array<i64: 32, 8>}, {pipeline_mode = #tpu.pipeline_mode<synchronous>, transform_indices = @transform_2, window_bounds = array<i64: 1, 8>}, {transform_indices = @transform_3, window_bounds = array<i64: 8, 128>}]} {
    %c0 = arith.constant 0 : index
    %c0_0 = arith.constant 0 : index
    %0 = vector.load %arg1[%c0, %c0_0] : memref<8x32xf32, #tpu.memory_space<vmem>>, vector<8x32xf32>
    %c0_1 = arith.constant 0 : index
    %c0_2 = arith.constant 0 : index
    %1 = vector.load %arg2[%c0_1, %c0_2] : memref<32x8xf32, #tpu.memory_space<vmem>>, vector<32x8xf32>
    %c0_3 = arith.constant 0 : index
    %c0_4 = arith.constant 0 : index
    %2 = vector.load %arg3[%c0_3, %c0_4] : memref<1x8xf32, #tpu.memory_space<vmem>>, vector<1x8xf32>
    %3 = arith.mulf %0, %0 : vector<8x32xf32>
    %cst = arith.constant dense<0.000000e+00> : vector<8xf32>
    %4 = vector.multi_reduction <add>, %3, %cst [1] : vector<8x32xf32> to vector<8xf32>
    %5 = vector.shape_cast %4 : vector<8xf32> to vector<8x1xf32>
    %cst_5 = arith.constant dense<0.000000e+00> : vector<8x8xf32>
    %6 = tpu.matmul %0, %1, %cst_5 {dimension_numbers = #tpu.dot_dimension_numbers<[1], [0], [0], [1], [0, 0, 1, 1], [], []>} : vector<8x32xf32>, vector<32x8xf32>, vector<8x8xf32> -> vector<8x8xf32>
    %cst_6 = arith.constant -2.000000e+00 : f32
    %7 = vector.broadcast %cst_6 : f32 to vector<8x8xf32>
    %8 = arith.mulf %7, %6 : vector<8x8xf32>
    %9 = vector.broadcast %5 : vector<8x1xf32> to vector<8x8xf32>
    %10 = arith.addf %8, %9 : vector<8x8xf32>
    %11 = vector.broadcast %2 : vector<1x8xf32> to vector<8x8xf32>
    %12 = arith.addf %10, %11 : vector<8x8xf32>
    %cst_7 = arith.constant 2.500000e-01 : f32
    %13 = vector.broadcast %cst_7 : f32 to vector<8x8xf32>
    %14 = arith.mulf %13, %12 : vector<8x8xf32>
    %cst_8 = arith.constant 1.000000e+00 : f32
    %15 = vector.broadcast %cst_8 : f32 to vector<8x8xf32>
    %16 = arith.addf %15, %14 : vector<8x8xf32>
    %cst_9 = arith.constant 1.000000e+00 : f32
    %17 = vector.broadcast %cst_9 : f32 to vector<8x8xf32>
    %18 = arith.divf %17, %16 : vector<8x8xf32>
    %19 = tpu.iota {dimensions = array<i32: 0>} : vector<8x128xi32>
    %20 = tpu.iota {dimensions = array<i32: 1>} : vector<8x128xi32>
    %c0_i32 = arith.constant 0 : i32
    %21 = vector.broadcast %c0_i32 : i32 to vector<8x128xi32>
    %22 = arith.cmpi eq, %19, %21 : vector<8x128xi32>
    %c0_i32_10 = arith.constant 0 : i32
    %23 = vector.broadcast %c0_i32_10 : i32 to vector<8x128xi32>
    %24 = arith.cmpi eq, %20, %23 : vector<8x128xi32>
    %25 = arith.andi %22, %24 : vector<8x128xi1>
    %26 = vector.shape_cast %18 : vector<8x8xf32> to vector<1x8x8xf32>
    %cst_11 = arith.constant dense<0.000000e+00> : vector<1xf32>
    %27 = vector.multi_reduction <add>, %26, %cst_11 [1, 2] : vector<1x8x8xf32> to vector<1xf32>
    %28 = vector.shape_cast %27 : vector<1xf32> to vector<1x1x1xf32>
    %29 = vector.extract %28[0, 0, 0] : f32 from vector<1x1x1xf32>
    %cst_12 = arith.constant 0.000000e+00 : f32
    %30 = vector.broadcast %29 : f32 to vector<8x128xf32>
    %31 = vector.broadcast %cst_12 : f32 to vector<8x128xf32>
    %32 = arith.select %25, %30, %31 : vector<8x128xi1>, vector<8x128xf32>
    %c0_13 = arith.constant 0 : index
    %c0_14 = arith.constant 0 : index
    %33 = vector.load %arg4[%c0_13, %c0_14] : memref<8x128xf32, #tpu.memory_space<vmem>>, vector<8x128xf32>
    tpu.vector_store %arg4[%c0_13, %c0_14], %32 {strides = array<i32>} : memref<8x128xf32, #tpu.memory_space<vmem>>, vector<8x128xf32>,
    return
  }
  func.func @transform_0(%arg0: i32) -> (i32, i32) {
    %c0_i32 = arith.constant 0 : i32
    %c0_i32_0 = arith.constant 0 : i32
    return %arg0, %c0_i32 : i32, i32
  }
  func.func @transform_1(%arg0: i32) -> (i32, i32) {
    %c0_i32 = arith.constant 0 : i32
    %c0_i32_0 = arith.constant 0 : i32
    %c0_i32_1 = arith.constant 0 : i32
    return %c0_i32, %c0_i32_0 : i32, i32
  }
  func.func @transform_2(%arg0: i32) -> (i32, i32) {
    %c0_i32 = arith.constant 0 : i32
    %c0_i32_0 = arith.constant 0 : i32
    %c0_i32_1 = arith.constant 0 : i32
    return %c0_i32, %c0_i32_0 : i32, i32
  }
  func.func @transform_3(%arg0: i32) -> (i32, i32) {
    %c0_i32 = arith.constant 0 : i32
    %c0_i32_0 = arith.constant 0 : i32
    return %arg0, %c0_i32 : i32, i32
  }
}

</mosaic_0001>

<bundles_post_ra>
// kernel: tpu_custom_call.1
= control target key start
LH: loop header
LB: loop body
LE: loop exit
PB: predicated region body
PF: predicated region fallthrough
CT: control target
= control target key end

     0   :  { %v203_v3 = vmov 0.0|0.0   ;;  %vm204_vm0 = vmmov 0   ;;  %v205_v6 = vmov 0.0   ;;  %s257_s0 = inlined_call_operand.vmem [shape: f32[8,32], index: 0, kind: input, shape index: {}]   ;;  %s258_s1 = inlined_call_operand.vmem [shape: f32[32,8], index: 1, kind: input, shape index: {}]   ;;  %s259_s2 = inlined_call_operand.vmem [shape: f32[1,8], index: 2, kind: input, shape index: {}]   ;;  %s260_s3 = inlined_call_operand.hbm [shape: f32[8,128], index: 3, kind: output, shape index: {}]  }
   0x1   :  { %v16_v0 = vld [vmem:[%s258_s1] sm:$0xff]  ;;  %v17_v1 = vld [vmem:[%s258_s1 + $0x8] sm:$0xff]  ;;  %v18_v2 = vld [vmem:[%s258_s1 + $0x10] sm:$0xff]  ;;  %165 = vmatprep.subr.bf16.mxu0 %v203_v3  ;;  %162 = vmatprep.mubr.msk.f32.mxu0 %vm204_vm0, %v205_v6 }
   0x2   :  { %v166_v4 = vpack.c.bf16 %v17_v1, %v16_v0  ;;  %v19_v5 = vld [vmem:[%s258_s1 + $0x18] sm:$0xff]  ;;  %v15_v7 = vld [vmem:[%s257_s0] sm:$0xff] }
   0x3   :  { %8 = vsyncpa [#allocation3], 0  ;;  %v21_v8 = vmul.f32 %v15_v7, %v15_v7  ;;  %v169_v9 = vpack.c.bf16 %v19_v5, %v18_v2  ;;  %vm22_vm1 = vcmask 261120   ;;  %v148_v15 = vld [vmem:[%s259_s2] ss:$0 sm:$0xff]  ;;  %vm119_vm2 = vcmask 64512  }
   0x4   :  { %167 = vmatpush3.bf16.msra.mxu0 %v166_v4  ;;  %v112_v29 = vlaneseq  ;;  %s206_s0 = smov [#allocation2]  }
   0x5   :  { %168 = vmatprep.subr.bf16.mxu0 %v203_v3  ;;  %v23_v10 = vsel %vm22_vm1, %v21_v8, 0.0  ;;  %s139_s2 = sshll.u32 %s206_s0, 4  ;;  %s140_s2 = int_to_ptr.vmem [resolvable:$true] %s139_s2 }
   0x6   :  { %24 = vadd.xlane.f32.xlu0 %v23_v10  ;;  %v113_v30 = vshrl.u32 %v112_v29, 7  ;;  %v115_v31 = vand.u32 127, %v112_v29  ;;  %s179_s24 = scalar_lea.vmem %s140_s2, 128  ;;  %p184_p1 = scmp.lt.s32.totalorder %s140_s2, %s140_s2 }
   0x7   :  { %p180_p0 = scmp.ne.s32.totalorder %s140_s2, %s179_s24  ;;  %p185_p2 = scmp.lt.s32.totalorder %s179_s24, %s179_s24 }
   0x8   :  { %170 = vmatpush3.bf16.msra.mxu0 %v169_v9  ;;  %vm116_vm3 = vcmp.eq.s32.totalorder %v113_v30, 0  ;;  %vm117_vm4 = vcmp.eq.s32.totalorder %v115_v31, 0 }
   0x9   :  { %vm118_vm5 = vmand %vm116_vm3, %vm117_vm4  ;;  %p186_p3 = por %p185_p2, %p184_p1 }
   0xb   :  { %163 = vmatmul.mubr.msk.f32.vlgmr.msra.gmra.mrb[0].mxu0 %vm22_vm1, %v15_v7  ;;  %p187_p4 = pnand %p186_p3, %p180_p0 }
  0x93   :  { %v25_v12 = vpop.xlane.xlu0 %24 }
  0xde   :  { %v95_v11 = vpop.f32.mrb[0].mxu0 }
  0xdf   :  { %v99_v13 = vmul.f32 -2.0, %v95_v11  ;;  %v164_v14 = vpop.f32.mrb[1].mxu0 }
  0xe1   :  { %v100_v16 = vadd.f32 %v99_v13, %v25_v12 }
  0xe3   :  { %v107_v17 = vadd.f32 %v148_v15, %v100_v16 }
  0xe5   :  { %v108_v18 = vmul.f32 0.25, %v107_v17 }
  0xe7   :  { %v109_v19 = vadd.f32 1.0, %v108_v18 }
  0xe9   :  { %177 = vrcp.f32 %v109_v19 }
  0xf3   :  { %v178_v20 = vpop.eup %177 }
  0xf4   :  { %v120_v21 = vsel %vm119_vm2, %v178_v20, 0.0 }
  0xf5   :  { %121 = vadd.xlane.f32.xlu0 %v120_v21 }
 0x182   :  { %v122_v22 = vpop.xlane.xlu0 %121 }
 0x183   :  { %v123_v23 = vrot.slane %v122_v22, 4 }
 0x185   :  { %v124_v24 = vadd.f32 %v123_v23, %v122_v22 }
 0x187   :  { %v125_v25 = vrot.slane %v124_v24, 2 }
 0x189   :  { %v126_v26 = vadd.f32 %v125_v25, %v124_v24 }
 0x18b   :  { %v127_v27 = vrot.slane %v126_v26, 1 }
 0x18d   :  { %v128_v28 = vadd.f32 %v127_v27, %v126_v26 }
 0x18f   :  { %171 = vpush %v128_v28 }
 0x1c0   :  { %s172_s23 = spop %171 }
 0x1c1   :  { %v130_v32 = vstv %s172_s23 }
 0x1c2   :  { %v131_v33 = vsel %vm118_vm5, %v130_v32, 0.0 }
 0x1c3   :  { %132 = vst [vmem:[#allocation2] sm:$0xff] %v131_v33 }
 0x1c4   :  { %190 = shalt.err (!%p187_p4)
}
 0x1c5   :  { %s191_s27 = scalar_lea.hbm %s260_s3, 128 }
 0x1c6   :  { %p192_p5 = scmp.ne.s32.totalorder %s260_s3, %s191_s27  ;;  %p195_p6 = scmp.lt.u32.totalorder %s191_s27, %s260_s3 }
 0x1c8   :  { %p197_p7 = pnand %p195_p6, %p192_p5 }
 0x1ca   :  { %200 = shalt.err (!%p197_p7)
}
 0x1cb   :  { %142 = dma.vmem_to_hbm [thread:$0]  %s140_s2, 128, %s260_s3, [#allocation3]  }
 0x1cc   :  { %201 = dma.done.wait [#allocation3], 128  }
 0x1cd   :  { %202 = vsyncadd [#allocation3], 4294967168 }
 0x1ce   :  { %146 = vsyncpa [#allocation3], 1 }

</bundles_post_ra>
